<compile_context>
chip_gen: v7x
topology: tpu7x:2x2x1
jax: 0.10.0
libtpu: 0.0.40
codegen_flags: <defaults>
</compile_context>

<pallas_src>
import jax
import jax.numpy as jnp
from jax.experimental import pallas as pl
from jax.experimental.pallas import tpu as pltpu


def age_prior_kernel(age_ref,
                     w1_ref, b1_ref,
                     w2_ref, b2_ref,
                     w3_ref, b3_ref,
                     wh_ref, bh_ref,
                     out_ref):
    age = age_ref[...]                                            # (TB, 1)

    # fc1 -> relu : K=1 contraction done on the VPU as a broadcast multiply.
    h = jnp.maximum(age * w1_ref[...] + b1_ref[...], 0.0)         # (TB, H)

    # fc2 -> relu -> dropout
    h = jnp.dot(h, w2_ref[...], preferred_element_type=jnp.float32) + b2_ref[...]
    h = jnp.maximum(h, 0.0)
    # TODO(synk): nn.Dropout(0.2) is identity in eval/inference mode; training-mode
    # stochastic masking (pltpu.prng_seed + prng_random_bits) intentionally omitted.

    # fc3 -> relu
    h = jnp.dot(h, w3_ref[...], preferred_element_type=jnp.float32) + b3_ref[...]
    h = jnp.maximum(h, 0.0)

    # fused heads: one matmul, one lane-dense (TB, 2*latent) store.
    out_ref[...] = (jnp.dot(h, wh_ref[...], preferred_element_type=jnp.float32)
                    + bh_ref[...])


def _choose_batch_tile(B):
    """Batch tile: whole batch when small, else a VMEM-friendly divisor."""
    if B <= 1024:
        return B
    for tb in (1024, 512, 256, 128, 64, 32, 16, 8):
        if B % tb == 0:
            return tb
    return B  # fall back to gridless full-batch block.


def age_prior_generator(age, params):
    """age: (B, 1) float32  ->  (pz_mean (B, L), pz_logvar (B, L))."""
    B = age.shape[0]
    hidden_dim = params["w2"].shape[0]
    latent_dim = params["wm"].shape[1]

    # Pack the two heads into one weight / bias for a single fused matmul.
    wh = jnp.concatenate([params["wm"], params["wv"]], axis=1)    # (H, 2L)
    bh = jnp.concatenate([params["bm"], params["bv"]], axis=1)    # (1, 2L)

    tb = _choose_batch_tile(B)
    grid = (B // tb,)

    # Weights/biases: full blocks, same block index every grid step -> DMA'd
    # once and VMEM-resident across the whole batch sweep.
    def resident(shape):
        return pl.BlockSpec(shape, lambda i: (0, 0))

    in_specs = [
        pl.BlockSpec((tb, 1), lambda i: (i, 0)),                  # age tile streams
        resident((1, hidden_dim)),  resident((1, hidden_dim)),    # w1, b1
        resident((hidden_dim, hidden_dim)), resident((1, hidden_dim)),  # w2, b2
        resident((hidden_dim, hidden_dim)), resident((1, hidden_dim)),  # w3, b3
        resident((hidden_dim, 2 * latent_dim)), resident((1, 2 * latent_dim)),  # wh, bh
    ]
    out_spec = pl.BlockSpec((tb, 2 * latent_dim), lambda i: (i, 0))

    # Advisory cost hint for XLA's scheduler around this custom call.
    flops = 2 * B * (hidden_dim * hidden_dim * 2          # fc2, fc3
                     + hidden_dim * 2 * latent_dim        # fused heads
                     + hidden_dim)                        # fc1 broadcast
    bytes_accessed = 4 * (B * 1                            # age
                          + 2 * hidden_dim                 # w1, b1
                          + 2 * (hidden_dim * hidden_dim + hidden_dim)  # fc2, fc3
                          + hidden_dim * 2 * latent_dim + 2 * latent_dim  # heads
                          + B * 2 * latent_dim)            # output
    cost = pl.CostEstimate(flops=flops, transcendentals=0,
                           bytes_accessed=bytes_accessed)

    fused = pl.pallas_call(
        age_prior_kernel,
        out_shape=jax.ShapeDtypeStruct((B, 2 * latent_dim), jnp.float32),
        grid=grid,
        in_specs=in_specs,
        out_specs=out_spec,
        compiler_params=pltpu.CompilerParams(
            dimension_semantics=("parallel",)),   # shards across TCs on v7x
        cost_estimate=cost,
    )(age,
      params["w1"], params["b1"],
      params["w2"], params["b2"],
      params["w3"], params["b3"],
      wh, bh)

    return fused[:, :latent_dim], fused[:, latent_dim:]


def init_params(key, latent_dim=32, hidden_dim=128):
    """Deterministic init matching nn.Linear shapes (weights stored transposed)."""
    def linear(k, fan_in, fan_out):
        kw, kb = jax.random.split(k)
        bound = 1.0 / jnp.sqrt(jnp.float32(fan_in))
        w = jax.random.uniform(kw, (fan_in, fan_out), jnp.float32, -bound, bound)
        b = jax.random.uniform(kb, (1, fan_out), jnp.float32, -bound, bound)
        return w, b

    k1, k2, k3, k4, k5 = jax.random.split(key, 5)
    w1, b1 = linear(k1, 1, hidden_dim)
    w2, b2 = linear(k2, hidden_dim, hidden_dim)
    w3, b3 = linear(k3, hidden_dim, hidden_dim)
    wm, bm = linear(k4, hidden_dim, latent_dim)
    wv, bv = linear(k5, hidden_dim, latent_dim)
    return dict(w1=w1, b1=b1, w2=w2, b2=b2, w3=w3, b3=b3,
                wm=wm, bm=bm, wv=wv, bv=bv)


def reference_forward(age, p):
    """Pure-JAX reference for sanity checking."""
    h = jax.nn.relu(age @ p["w1"] + p["b1"])
    h = jax.nn.relu(h @ p["w2"] + p["b2"])   # dropout = identity (eval)
    h = jax.nn.relu(h @ p["w3"] + p["b3"])
    return h @ p["wm"] + p["bm"], h @ p["wv"] + p["bv"]


if __name__ == "__main__":
    key = jax.random.PRNGKey(0)
    k_params, k_age = jax.random.split(key)

    B, latent_dim, hidden_dim = 8, 32, 128
    params = init_params(k_params, latent_dim=latent_dim, hidden_dim=hidden_dim)
    # ages in [0, 100), normalized to [0, 1)
    age = jax.random.uniform(k_age, (B, 1), jnp.float32, 0.0, 100.0) / 100.0

    pz_mean, pz_logvar = age_prior_generator(age, params)
    jax.block_until_ready((pz_mean, pz_logvar))

    ref_mean, ref_logvar = reference_forward(age, params)
    assert pz_mean.shape == (B, latent_dim) and pz_logvar.shape == (B, latent_dim)
    assert jnp.allclose(pz_mean, ref_mean, atol=1e-5, rtol=1e-5)
    assert jnp.allclose(pz_logvar, ref_logvar, atol=1e-5, rtol=1e-5)

    print("KERNEL_OK")
</pallas_src>

<mosaic_0001>
module attributes {stable_mosaic.version = 11 : i64} {
  func.func @age_prior_kernel(%arg0: i32, %arg1: memref<8x1xf32, #tpu.memory_space<vmem>>, %arg2: memref<1x128xf32, #tpu.memory_space<vmem>>, %arg3: memref<1x128xf32, #tpu.memory_space<vmem>>, %arg4: memref<128x128xf32, #tpu.memory_space<vmem>>, %arg5: memref<1x128xf32, #tpu.memory_space<vmem>>, %arg6: memref<128x128xf32, #tpu.memory_space<vmem>>, %arg7: memref<1x128xf32, #tpu.memory_space<vmem>>, %arg8: memref<128x64xf32, #tpu.memory_space<vmem>>, %arg9: memref<1x64xf32, #tpu.memory_space<vmem>>, %arg10: memref<8x64xf32, #tpu.memory_space<vmem>>) attributes {dimension_semantics = [#tpu.dimension_semantics<parallel>], iteration_bounds = array<i64: 1>, scalar_prefetch = 0 : i64, scratch_operands = 0 : i64, tpu.core_type = #tpu.core_type<tc>, window_params = [{transform_indices = @transform_0, window_bounds = array<i64: 8, 1>}, {pipeline_mode = #tpu.pipeline_mode<synchronous>, transform_indices = @transform_1, window_bounds = array<i64: 1, 128>}, {pipeline_mode = #tpu.pipeline_mode<synchronous>, transform_indices = @transform_2, window_bounds = array<i64: 1, 128>}, {pipeline_mode = #tpu.pipeline_mode<synchronous>, transform_indices = @transform_3, window_bounds = array<i64: 128, 128>}, {pipeline_mode = #tpu.pipeline_mode<synchronous>, transform_indices = @transform_4, window_bounds = array<i64: 1, 128>}, {pipeline_mode = #tpu.pipeline_mode<synchronous>, transform_indices = @transform_5, window_bounds = array<i64: 128, 128>}, {pipeline_mode = #tpu.pipeline_mode<synchronous>, transform_indices = @transform_6, window_bounds = array<i64: 1, 128>}, {pipeline_mode = #tpu.pipeline_mode<synchronous>, transform_indices = @transform_7, window_bounds = array<i64: 128, 64>}, {pipeline_mode = #tpu.pipeline_mode<synchronous>, transform_indices = @transform_8, window_bounds = array<i64: 1, 64>}, {transform_indices = @transform_9, window_bounds = array<i64: 8, 64>}]} {
    %c0 = arith.constant 0 : index
    %c0_0 = arith.constant 0 : index
    %0 = vector.load %arg1[%c0, %c0_0] : memref<8x1xf32, #tpu.memory_space<vmem>>, vector<8x1xf32>
    %c0_1 = arith.constant 0 : index
    %c0_2 = arith.constant 0 : index
    %1 = vector.load %arg2[%c0_1, %c0_2] : memref<1x128xf32, #tpu.memory_space<vmem>>, vector<1x128xf32>
    %2 = vector.broadcast %0 : vector<8x1xf32> to vector<8x128xf32>
    %3 = vector.broadcast %1 : vector<1x128xf32> to vector<8x128xf32>
    %4 = arith.mulf %2, %3 : vector<8x128xf32>
    %c0_3 = arith.constant 0 : index
    %c0_4 = arith.constant 0 : index
    %5 = vector.load %arg3[%c0_3, %c0_4] : memref<1x128xf32, #tpu.memory_space<vmem>>, vector<1x128xf32>
    %6 = vector.broadcast %5 : vector<1x128xf32> to vector<8x128xf32>
    %7 = arith.addf %4, %6 : vector<8x128xf32>
    %cst = arith.constant 0.000000e+00 : f32
    %8 = vector.broadcast %cst : f32 to vector<8x128xf32>
    %9 = arith.maximumf %7, %8 : vector<8x128xf32>
    %c0_5 = arith.constant 0 : index
    %c0_6 = arith.constant 0 : index
    %10 = vector.load %arg4[%c0_5, %c0_6] : memref<128x128xf32, #tpu.memory_space<vmem>>, vector<128x128xf32>
    %cst_7 = arith.constant dense<0.000000e+00> : vector<8x128xf32>
    %11 = tpu.matmul %9, %10, %cst_7 {dimension_numbers = #tpu.dot_dimension_numbers<[1], [0], [0], [1], [0, 0, 1, 1], [], []>} : vector<8x128xf32>, vector<128x128xf32>, vector<8x128xf32> -> vector<8x128xf32>
    %c0_8 = arith.constant 0 : index
    %c0_9 = arith.constant 0 : index
    %12 = vector.load %arg5[%c0_8, %c0_9] : memref<1x128xf32, #tpu.memory_space<vmem>>, vector<1x128xf32>
    %13 = vector.broadcast %12 : vector<1x128xf32> to vector<8x128xf32>
    %14 = arith.addf %11, %13 : vector<8x128xf32>
    %cst_10 = arith.constant 0.000000e+00 : f32
    %15 = vector.broadcast %cst_10 : f32 to vector<8x128xf32>
    %16 = arith.maximumf %14, %15 : vector<8x128xf32>
    %c0_11 = arith.constant 0 : index
    %c0_12 = arith.constant 0 : index
    %17 = vector.load %arg6[%c0_11, %c0_12] : memref<128x128xf32, #tpu.memory_space<vmem>>, vector<128x128xf32>
    %cst_13 = arith.constant dense<0.000000e+00> : vector<8x128xf32>
    %18 = tpu.matmul %16, %17, %cst_13 {dimension_numbers = #tpu.dot_dimension_numbers<[1], [0], [0], [1], [0, 0, 1, 1], [], []>} : vector<8x128xf32>, vector<128x128xf32>, vector<8x128xf32> -> vector<8x128xf32>
    %c0_14 = arith.constant 0 : index
    %c0_15 = arith.constant 0 : index
    %19 = vector.load %arg7[%c0_14, %c0_15] : memref<1x128xf32, #tpu.memory_space<vmem>>, vector<1x128xf32>
    %20 = vector.broadcast %19 : vector<1x128xf32> to vector<8x128xf32>
    %21 = arith.addf %18, %20 : vector<8x128xf32>
    %cst_16 = arith.constant 0.000000e+00 : f32
    %22 = vector.broadcast %cst_16 : f32 to vector<8x128xf32>
    %23 = arith.maximumf %21, %22 : vector<8x128xf32>
    %c0_17 = arith.constant 0 : index
    %c0_18 = arith.constant 0 : index
    %24 = vector.load %arg8[%c0_17, %c0_18] : memref<128x64xf32, #tpu.memory_space<vmem>>, vector<128x64xf32>
    %cst_19 = arith.constant dense<0.000000e+00> : vector<8x64xf32>
    %25 = tpu.matmul %23, %24, %cst_19 {dimension_numbers = #tpu.dot_dimension_numbers<[1], [0], [0], [1], [0, 0, 1, 1], [], []>} : vector<8x128xf32>, vector<128x64xf32>, vector<8x64xf32> -> vector<8x64xf32>
    %c0_20 = arith.constant 0 : index
    %c0_21 = arith.constant 0 : index
    %26 = vector.load %arg9[%c0_20, %c0_21] : memref<1x64xf32, #tpu.memory_space<vmem>>, vector<1x64xf32>
    %27 = vector.broadcast %26 : vector<1x64xf32> to vector<8x64xf32>
    %28 = arith.addf %25, %27 : vector<8x64xf32>
    %c0_22 = arith.constant 0 : index
    %c0_23 = arith.constant 0 : index
    %29 = vector.load %arg10[%c0_22, %c0_23] : memref<8x64xf32, #tpu.memory_space<vmem>>, vector<8x64xf32>
    tpu.vector_store %arg10[%c0_22, %c0_23], %28 {strides = array<i32>} : memref<8x64xf32, #tpu.memory_space<vmem>>, vector<8x64xf32>,
    return
  }
  func.func @transform_0(%arg0: i32) -> (i32, i32) {
    %c0_i32 = arith.constant 0 : i32
    %c0_i32_0 = arith.constant 0 : i32
    return %arg0, %c0_i32 : i32, i32
  }
  func.func @transform_1(%arg0: i32) -> (i32, i32) {
    %c0_i32 = arith.constant 0 : i32
    %c0_i32_0 = arith.constant 0 : i32
    %c0_i32_1 = arith.constant 0 : i32
    return %c0_i32, %c0_i32_0 : i32, i32
  }
  func.func @transform_2(%arg0: i32) -> (i32, i32) {
    %c0_i32 = arith.constant 0 : i32
    %c0_i32_0 = arith.constant 0 : i32
    %c0_i32_1 = arith.constant 0 : i32
    return %c0_i32, %c0_i32_0 : i32, i32
  }
  func.func @transform_3(%arg0: i32) -> (i32, i32) {
    %c0_i32 = arith.constant 0 : i32
    %c0_i32_0 = arith.constant 0 : i32
    %c0_i32_1 = arith.constant 0 : i32
    return %c0_i32, %c0_i32_0 : i32, i32
  }
  func.func @transform_4(%arg0: i32) -> (i32, i32) {
    %c0_i32 = arith.constant 0 : i32
    %c0_i32_0 = arith.constant 0 : i32
    %c0_i32_1 = arith.constant 0 : i32
    return %c0_i32, %c0_i32_0 : i32, i32
  }
  func.func @transform_5(%arg0: i32) -> (i32, i32) {
    %c0_i32 = arith.constant 0 : i32
    %c0_i32_0 = arith.constant 0 : i32
    %c0_i32_1 = arith.constant 0 : i32
    return %c0_i32, %c0_i32_0 : i32, i32
  }
  func.func @transform_6(%arg0: i32) -> (i32, i32) {
    %c0_i32 = arith.constant 0 : i32
    %c0_i32_0 = arith.constant 0 : i32
    %c0_i32_1 = arith.constant 0 : i32
    return %c0_i32, %c0_i32_0 : i32, i32
  }
  func.func @transform_7(%arg0: i32) -> (i32, i32) {
    %c0_i32 = arith.constant 0 : i32
    %c0_i32_0 = arith.constant 0 : i32
    %c0_i32_1 = arith.constant 0 : i32
    return %c0_i32, %c0_i32_0 : i32, i32
  }
  func.func @transform_8(%arg0: i32) -> (i32, i32) {
    %c0_i32 = arith.constant 0 : i32
    %c0_i32_0 = arith.constant 0 : i32
    %c0_i32_1 = arith.constant 0 : i32
    return %c0_i32, %c0_i32_0 : i32, i32
  }
  func.func @transform_9(%arg0: i32) -> (i32, i32) {
    %c0_i32 = arith.constant 0 : i32
    %c0_i32_0 = arith.constant 0 : i32
    return %arg0, %c0_i32 : i32, i32
  }
}

</mosaic_0001>

<bundles_post_ra>
// kernel: tpu_custom_call.1
= control target key start
LH: loop header
LB: loop body
LE: loop exit
PB: predicated region body
PF: predicated region fallthrough
CT: control target
= control target key end

     0   :  { %14 = vsyncpa [#allocation3], 0  ;;  %s884_s0 = inlined_call_operand.vmem [shape: f32[8,1], index: 0, kind: input, shape index: {}]   ;;  %s885_s1 = inlined_call_operand.vmem [shape: f32[1,128], index: 1, kind: input, shape index: {}]   ;;  %s886_s2 = inlined_call_operand.vmem [shape: f32[1,128], index: 2, kind: input, shape index: {}]   ;;  %s887_s3 = inlined_call_operand.vmem [shape: f32[128,128], index: 3, kind: input, shape index: {}]   ;;  %s888_s4 = inlined_call_operand.vmem [shape: f32[1,128], index: 4, kind: input, shape index: {}]   ;;  %s889_s5 = inlined_call_operand.hbm [shape: f32[128,128], index: 5, kind: input, shape index: {}]   ;;  %s890_s6 = inlined_call_operand.vmem [shape: f32[1,128], index: 6, kind: input, shape index: {}]   ;;  %s891_s7 = inlined_call_operand.vmem [shape: f32[128,64], index: 7, kind: input, shape index: {}]   ;;  %s892_s8 = inlined_call_operand.vmem [shape: f32[1,64], index: 8, kind: input, shape index: {}]   ;;  %s893_s9 = inlined_call_operand.hbm [shape: f32[8,64], index: 9, kind: output, shape index: {}]  }
   0x1   :  { %15 = vsyncpa [#allocation4], 0  ;;  %s658_s30 = smov [#allocation2]   ;;  %s610_s13 = scalar_lea.hbm %s889_s5, 2048 }
   0x2   :  { %s31_s10 = sshll.u32 %s658_s30, 4  ;;  %p611_p0 = scmp.ne.s32.totalorder %s889_s5, %s610_s13  ;;  %s32_s10 = int_to_ptr.vmem [resolvable:$true] %s31_s10 }
   0x3   :  { %p614_p1 = scmp.lt.u32.totalorder %s610_s13, %s889_s5 }
   0x5   :  { %p616_p2 = pnand %p614_p1, %p611_p0 }
   0x7   :  { %619 = shalt.err (!%p616_p2)
}
   0x8   :  { %s620_s18 = scalar_lea.vmem %s32_s10, 2048  ;;  %p625_p4 = scmp.lt.s32.totalorder %s32_s10, %s32_s10 }
   0x9   :  { %p621_p3 = scmp.ne.s32.totalorder %s32_s10, %s620_s18  ;;  %p626_p5 = scmp.lt.s32.totalorder %s620_s18, %s620_s18 }
   0xb   :  { %p627_p6 = por %p626_p5, %p625_p4 }
   0xd   :  { %p628_p7 = pnand %p627_p6, %p621_p3 }
   0xf   :  { %631 = shalt.err (!%p628_p7)
}
  0x10   :  { %s659_s19 = smov 128   ;;  %s660_s20 = smov 8  }
  0x11   :  { %37 = dma.hbm_to_vmem [thread:$0]  %s889_s5, 2048, %s32_s10, [#allocation3], %s659_s19, %s659_s19, %s660_s20  }
  0x12   :  { %654 = dma.done.wait [#allocation3], 2048  }
  0x13   :  { %655 = vsyncadd [#allocation3], 4294965248  ;;  %v661_v0 = vmov 0   ;;  %v662_v1 = vmov 0.0|0.0   ;;  %v47_v2 = vld [vmem:[%s884_s0] sm:$0xff]  ;;  %v71_v4 = vld [vmem:[%s887_s3 + $0x8] sm:$0xff] }
  0x14   :  { %609 = vset.pattern.permute.xlu0 %v661_v0  ;;  %529 = vmatprep.subr.bf16.mxu0 %v662_v1  ;;  %v70_v3 = vld [vmem:[%s887_s3] sm:$0xff]  ;;  %v72_v6 = vld [vmem:[%s887_s3 + $0x10] sm:$0xff]  ;;  %v73_v7 = vld [vmem:[%s887_s3 + $0x18] sm:$0xff]  ;;  %vm663_vm0 = vmmov 0   ;;  %v664_v12 = vmov 0.0   ;;  %s665_s23 = smov [#allocation5]  }
  0x15   :  { %553 = vmatprep.subr.bf16.mxu1 %v662_v1  ;;  %51 = vperm.xlu0 %609, %v47_v2   ;;  %v530_v5 = vpack.c.bf16 %v71_v4, %v70_v3  ;;  %v533_v8 = vpack.c.bf16 %v73_v7, %v72_v6  ;;  %v74_v9 = vld [vmem:[%s887_s3 + $0x20] sm:$0xff]  ;;  %v75_v10 = vld [vmem:[%s887_s3 + $0x28] sm:$0xff]  ;;  %v166_v15 = vld [vmem:[#allocation2 + $0x10] sm:$0xff]  ;;  %s359_s24 = sshll.u32 %s665_s23, 4  ;;  %vm351_vm1 = vcmask 523264   ;;  %s360_s24 = int_to_ptr.vmem [resolvable:$true] %s359_s24 }
  0x16   :  { %v536_v11 = vpack.c.bf16 %v75_v10, %v74_v9  ;;  %456 = vmatprep.mubr.msk.f32.mxu0 %vm663_vm0, %v664_v12  ;;  %v164_v13 = vld [vmem:[#allocation2] sm:$0xff]  ;;  %v165_v14 = vld [vmem:[#allocation2 + $0x8] sm:$0xff]  ;;  %v76_v16 = vld [vmem:[%s887_s3 + $0x30] sm:$0xff]  ;;  %491 = vmatprep.mubr.msk.f32.mxu1 %vm663_vm0, %v664_v12  ;;  %p637_p9 = scmp.lt.s32.totalorder %s360_s24, %s360_s24 }
  0x17   :  { %531 = vmatpush3.bf16.msra.mxu0 %v530_v5  ;;  %v77_v17 = vld [vmem:[%s887_s3 + $0x38] sm:$0xff]  ;;  %v554_v18 = vpack.c.bf16 %v165_v14, %v164_v13  ;;  %v168_v22 = vld [vmem:[#allocation2 + $0x20] sm:$0xff]  ;;  %v169_v23 = vld [vmem:[#allocation2 + $0x28] sm:$0xff] }
  0x18   :  { %532 = vmatprep.subr.bf16.mxu0 %v662_v1  ;;  %v167_v19 = vld [vmem:[#allocation2 + $0x18] sm:$0xff]  ;;  %v539_v21 = vpack.c.bf16 %v77_v17, %v76_v16  ;;  %v78_v24 = vld [vmem:[%s887_s3 + $0x40] sm:$0xff]  ;;  %v79_v25 = vld [vmem:[%s887_s3 + $0x48] sm:$0xff]  ;;  %v560_v26 = vpack.c.bf16 %v169_v23, %v168_v22 }
  0x19   :  { %555 = vmatpush3.bf16.msra.mxu1 %v554_v18  ;;  %v557_v20 = vpack.c.bf16 %v167_v19, %v166_v15  ;;  %v542_v27 = vpack.c.bf16 %v79_v25, %v78_v24  ;;  %v170_v28 = vld [vmem:[#allocation2 + $0x30] sm:$0xff]  ;;  %v171_v29 = vld [vmem:[#allocation2 + $0x38] sm:$0xff]  ;;  %v172_v34 = vld [vmem:[#allocation2 + $0x40] sm:$0xff] }
  0x1a   :  { %556 = vmatprep.subr.bf16.mxu1 %v662_v1  ;;  %v80_v30 = vld [vmem:[%s887_s3 + $0x50] sm:$0xff]  ;;  %v81_v31 = vld [vmem:[%s887_s3 + $0x58] sm:$0xff]  ;;  %v563_v32 = vpack.c.bf16 %v171_v29, %v170_v28  ;;  %v173_v35 = vld [vmem:[#allocation2 + $0x48] sm:$0xff] }
  0x1b   :  { %534 = vmatpush3.bf16.msra.mxu0 %v533_v8  ;;  %v545_v33 = vpack.c.bf16 %v81_v31, %v80_v30  ;;  %v82_v36 = vld [vmem:[%s887_s3 + $0x60] sm:$0xff]  ;;  %v83_v37 = vld [vmem:[%s887_s3 + $0x68] sm:$0xff]  ;;  %v566_v38 = vpack.c.bf16 %v173_v35, %v172_v34  ;;  %v174_v40 = vld [vmem:[#allocation2 + $0x50] sm:$0xff] }
  0x1c   :  { %535 = vmatprep.subr.bf16.mxu0 %v662_v1  ;;  %v548_v39 = vpack.c.bf16 %v83_v37, %v82_v36  ;;  %v175_v41 = vld [vmem:[#allocation2 + $0x58] sm:$0xff]  ;;  %v84_v42 = vld [vmem:[%s887_s3 + $0x70] sm:$0xff]  ;;  %v176_v46 = vld [vmem:[#allocation2 + $0x60] sm:$0xff] }
  0x1d   :  { %558 = vmatpush3.bf16.msra.mxu1 %v557_v20  ;;  %v85_v43 = vld [vmem:[%s887_s3 + $0x78] sm:$0xff]  ;;  %v569_v44 = vpack.c.bf16 %v175_v41, %v174_v40  ;;  %v177_v47 = vld [vmem:[#allocation2 + $0x68] sm:$0xff]  ;;  %v368_v49 = vld [vmem:[%s885_s1] ss:$0 sm:$0xff] }
  0x1e   :  { %559 = vmatprep.subr.bf16.mxu1 %v662_v1  ;;  %v551_v45 = vpack.c.bf16 %v85_v43, %v84_v42  ;;  %v572_v48 = vpack.c.bf16 %v177_v47, %v176_v46  ;;  %v369_v50 = vld [vmem:[%s886_s2] ss:$0 sm:$0xff]  ;;  %v178_v55 = vld [vmem:[#allocation2 + $0x70] sm:$0xff]  ;;  %v179_v56 = vld [vmem:[#allocation2 + $0x78] sm:$0xff] }
  0x1f   :  { %537 = vmatpush3.bf16.msra.mxu0 %v536_v11  ;;  %v575_v57 = vpack.c.bf16 %v179_v56, %v178_v55  ;;  %v258_v58 = vld [vmem:[%s891_s7] sm:$0xff]  ;;  %v259_v59 = vld [vmem:[%s891_s7 + $0x8] sm:$0xff]  ;;  %v260_v60 = vld [vmem:[%s891_s7 + $0x10] sm:$0xff] }
  0x20   :  { %538 = vmatprep.subr.bf16.mxu0 %v662_v1  ;;  %v578_v61 = vpack.c.bf16 %v259_v59, %v258_v58  ;;  %v261_v62 = vld [vmem:[%s891_s7 + $0x18] sm:$0xff]  ;;  %v262_v0 = vld [vmem:[%s891_s7 + $0x20] sm:$0xff]  ;;  %v263_v2 = vld [vmem:[%s891_s7 + $0x28] sm:$0xff] }
  0x21   :  { %561 = vmatpush3.bf16.msra.mxu1 %v560_v26  ;;  %v581_v63 = vpack.c.bf16 %v261_v62, %v260_v60  ;;  %v584_v3 = vpack.c.bf16 %v263_v2, %v262_v0  ;;  %v264_v4 = vld [vmem:[%s891_s7 + $0x30] sm:$0xff]  ;;  %v265_v5 = vld [vmem:[%s891_s7 + $0x38] sm:$0xff]  ;;  %v266_v7 = vld [vmem:[%s891_s7 + $0x40] sm:$0xff] }
  0x22   :  { %562 = vmatprep.subr.bf16.mxu1 %v662_v1  ;;  %v587_v6 = vpack.c.bf16 %v265_v5, %v264_v4  ;;  %v267_v8 = vld [vmem:[%s891_s7 + $0x48] sm:$0xff]  ;;  %v268_v10 = vld [vmem:[%s891_s7 + $0x50] sm:$0xff]  ;;  %v269_v11 = vld [vmem:[%s891_s7 + $0x58] sm:$0xff] }
  0x23   :  { %540 = vmatpush3.bf16.msra.mxu0 %v539_v21  ;;  %v590_v9 = vpack.c.bf16 %v267_v8, %v266_v7  ;;  %v270_v13 = vld [vmem:[%s891_s7 + $0x60] sm:$0xff]  ;;  %v271_v14 = vld [vmem:[%s891_s7 + $0x68] sm:$0xff]  ;;  %v272_v21 = vld [vmem:[%s891_s7 + $0x70] sm:$0xff] }
  0x24   :  { %541 = vmatprep.subr.bf16.mxu0 %v662_v1  ;;  %v596_v15 = vpack.c.bf16 %v271_v14, %v270_v13  ;;  %v370_v16 = vld [vmem:[%s888_s4] ss:$0 sm:$0xff]  ;;  %v273_v22 = vld [vmem:[%s891_s7 + $0x78] sm:$0xff]  ;;  %s632_s7 = scalar_lea.vmem %s360_s24, 128 }
  0x25   :  { %564 = vmatpush3.bf16.msra.mxu1 %v563_v32  ;;  %v599_v23 = vpack.c.bf16 %v273_v22, %v272_v21  ;;  %v372_v28 = vld [vmem:[%s892_s8] ss:$0 sm:$0xff]  ;;  %p633_p8 = scmp.ne.s32.totalorder %s360_s24, %s632_s7  ;;  %p638_p10 = scmp.lt.s32.totalorder %s632_s7, %s632_s7 }
  0x26   :  { %565 = vmatprep.subr.bf16.mxu1 %v662_v1 }
  0x27   :  { %543 = vmatpush3.bf16.msra.mxu0 %v542_v27  ;;  %p639_p11 = por %p638_p10, %p637_p9 }
  0x28   :  { %544 = vmatprep.subr.bf16.mxu0 %v662_v1 }
  0x29   :  { %567 = vmatpush3.bf16.msra.mxu1 %v566_v38  ;;  %p640_p12 = pnand %p639_p11, %p633_p8 }
  0x2a   :  { %568 = vmatprep.subr.bf16.mxu1 %v662_v1 }
  0x2b   :  { %546 = vmatpush3.bf16.msra.mxu0 %v545_v33 }
  0x2c   :  { %547 = vmatprep.subr.bf16.mxu0 %v662_v1 }
  0x2d   :  { %570 = vmatpush3.bf16.msra.mxu1 %v569_v44 }
  0x2e   :  { %571 = vmatprep.subr.bf16.mxu1 %v662_v1 }
  0x2f   :  { %549 = vmatpush3.bf16.msra.mxu0 %v548_v39 }
  0x30   :  { %550 = vmatprep.subr.bf16.mxu0 %v662_v1 }
  0x31   :  { %573 = vmatpush3.bf16.msra.mxu1 %v572_v48 }
  0x32   :  { %574 = vmatprep.subr.bf16.mxu1 %v662_v1 }
  0x33   :  { %552 = vmatpush3.bf16.msra.mxu0 %v551_v45 }
  0x34   :  { %577 = vmatprep.subr.bf16.mxu0 %v662_v1 }
  0x35   :  { %576 = vmatpush3.bf16.msra.mxu1 %v575_v57 }
  0x94   :  { %v52_v51 = vpop.permute.xlu0 %51 }
  0x95   :  { %v60_v52 = vmul.f32 %v368_v49, %v52_v51 }
  0x97   :  { %v68_v53 = vadd.f32 %v369_v50, %v60_v52 }
  0x99   :  { %v69_v54 = vmax.f32 %v68_v53, 0.0 }
  0x9b   :  { %457 = vmatmul.mubr.f32.vlgmr.msra.gmra.mrb[0].mxu0 %v69_v54 }
  0x9c   :  { %526 = vmatprep.mubr.msk.f32.mxu0 %vm663_vm0, %v664_v12  ;;  %579 = vmatpush3.bf16.msra.mxu0 %v578_v61  ;;  %v593_v12 = vpack.c.bf16 %v269_v11, %v268_v10 }
  0x9d   :  { %580 = vmatprep.subr.bf16.mxu0 %v662_v1 }
  0xa0   :  { %582 = vmatpush3.bf16.msra.mxu0 %v581_v63 }
  0xa1   :  { %583 = vmatprep.subr.bf16.mxu0 %v662_v1 }
  0xa4   :  { %585 = vmatpush3.bf16.msra.mxu0 %v584_v3 }
  0xa5   :  { %586 = vmatprep.subr.bf16.mxu0 %v662_v1 }
  0xa8   :  { %588 = vmatpush3.bf16.msra.mxu0 %v587_v6 }
  0xa9   :  { %589 = vmatprep.subr.bf16.mxu0 %v662_v1 }
  0xac   :  { %591 = vmatpush3.bf16.msra.mxu0 %v590_v9 }
  0xad   :  { %592 = vmatprep.subr.bf16.mxu0 %v662_v1 }
  0xb0   :  { %594 = vmatpush3.bf16.msra.mxu0 %v593_v12 }
  0xb1   :  { %595 = vmatprep.subr.bf16.mxu0 %v662_v1 }
  0xb4   :  { %597 = vmatpush3.bf16.msra.mxu0 %v596_v15 }
  0xb5   :  { %598 = vmatprep.subr.bf16.mxu0 %v662_v1  ;;  %v371_v1 = vld [vmem:[%s890_s6] ss:$0 sm:$0xff] }
  0xb8   :  { %600 = vmatpush3.bf16.msra.mxu0 %v599_v23 }
 0x16e   :  { %v159_v17 = vpop.f32.mrb[0].mxu0 }
 0x16f   :  { %v160_v18 = vadd.f32 %v370_v16, %v159_v17  ;;  %v458_v19 = vpop.f32.mrb[1].mxu0 }
 0x171   :  { %v163_v20 = vmax.f32 %v160_v18, 0.0 }
 0x173   :  { %492 = vmatmul.mubr.f32.vlgmr.msra.gmra.mrb[0].mxu1 %v163_v20 }
 0x246   :  { %v253_v24 = vpop.f32.mrb[0].mxu1 }
 0x247   :  { %v254_v25 = vadd.f32 %v371_v1, %v253_v24  ;;  %v493_v26 = vpop.f32.mrb[1].mxu1 }
 0x249   :  { %v257_v27 = vmax.f32 %v254_v25, 0.0 }
 0x24b   :  { %527 = vmatmul.mubr.f32.vlgmr.msra.gmra.mrb[2].mxu0 %v257_v27 }
 0x31e   :  { %v347_v29 = vpop.f32.mrb[2].mxu0 }
 0x31f   :  { %v348_v30 = vadd.f32 %v372_v28, %v347_v29  ;;  %v528_v31 = vpop.f32.mrb[3].mxu0 }
 0x321   :  { %352 = vst.msk [vmem:[#allocation5] sm:$0xff] %vm351_vm1, %v348_v30 }
 0x322   :  { %643 = shalt.err (!%p640_p12)
}
 0x323   :  { %s644_s26 = scalar_lea.hbm %s893_s9, 128 }
 0x324   :  { %p645_p13 = scmp.ne.s32.totalorder %s893_s9, %s644_s26  ;;  %p648_p0 = scmp.lt.u32.totalorder %s644_s26, %s893_s9 }
 0x326   :  { %p650_p1 = pnand %p648_p0, %p645_p13 }
 0x328   :  { %653 = shalt.err (!%p650_p1)
}
 0x329   :  { %362 = dma.vmem_to_hbm [thread:$0]  %s360_s24, 128, %s893_s9, [#allocation4]  }
 0x32a   :  { %656 = dma.done.wait [#allocation4], 128  }
 0x32b   :  { %657 = vsyncadd [#allocation4], 4294967168 }
 0x32c   :  { %366 = vsyncpa [#allocation3], 1 }
 0x32d   :  { %367 = vsyncpa [#allocation4], 1 }

</bundles_post_ra>
